<compile_context>
chip_gen: v5e
topology: v5e:2x2
jax: 0.10.0
libtpu: 0.0.40
codegen_flags: <defaults>
</compile_context>

<pallas_src>
import jax
import jax.numpy as jnp
from jax.experimental import pallas as pl
from jax.experimental.pallas import tpu as pltpu

_LANE = 128
_SUBLANE = 8
_ROW_ALIGN = 256          # MXU-friendly row tile granularity for large M
_MAX_TILE_M = 2048
_SMALL_M = 512            # below this, a single sublane-aligned tile is fine
_MIN_M_STEPS = 4          # >=4 row tiles -> double-buffering + v7x megacore


def _round_up(x, m):
    return ((x + m - 1) // m) * m


def _row_align(*dtypes):
    """Sublane packing for the row (second-minor) dim: 8 f32 / 16 bf16 / 32 int8."""
    a = _SUBLANE
    for dt in dtypes:
        a = max(a, (4 // jnp.dtype(dt).itemsize) * _SUBLANE)
    return a


def _vmem_budget_and_limit():
    """Generation-aware VMEM sizing (v5e/v6e: 128 MiB, v7x: 64 MiB per core)."""
    phys = None
    try:
        info = pltpu.get_tpu_info()
        for name in ("vmem_capacity_bytes", "vmem_bytes", "vmem_size_bytes"):
            v = getattr(info, name, None)
            if v:
                phys = int(v)
                break
    except Exception:
        phys = None
    if not phys:
        phys = 64 << 20                      # conservative fallback (v7x per-core)
    limit = max(phys - (16 << 20), 32 << 20)   # vmem_limit_bytes we request
    budget = max(phys - (28 << 20), 24 << 20)  # what the tiling math plans against
    return budget, limit


def pooler_kernel(x_ref, w_ref, b_ref, o_ref):
    # x_ref: (tile_m, K), w_ref: (K, tile_n), b_ref: (1, tile_n) f32
    x = x_ref[...]
    if x.dtype != w_ref.dtype:
        # In-kernel cast on the VPU (free vs the MXU) instead of a wrapper-side
        # astype, which would cost an extra full HBM pass over x.
        x = x.astype(w_ref.dtype)
    y = jnp.dot(x, w_ref[...], preferred_element_type=jnp.float32)
    y = y + b_ref[...]                       # f32 bias add, broadcast over rows
    o_ref[...] = jnp.tanh(y).astype(o_ref.dtype)


def prepare_pooler_params(weight, bias, compute_dtype=None):
    """One-time parameter prep (call once at load time, NOT per forward).

    weight: [H_out, H_in] in PyTorch nn.Linear layout; bias: [H_out].
    Returns (w_t, b2d): weight transposed to [H_in, Hp_out] with the OUTPUT dim
    zero-padded to a lane multiple (the K dim stays un-padded so activations
    never need a feature pad), optionally cast to `compute_dtype`
    (e.g. jnp.bfloat16); bias padded and kept in f32.
    """
    H_out, H_in = weight.shape
    Hp_out = _round_up(H_out, _LANE)
    # TODO(synk): on v6e/v7x, rounding Hp_out to 256 fills both MXU halves for
    # non-standard hidden sizes (768/1024/4096 are already 256-aligned).
    w_t = jnp.asarray(weight).T                                   # done once, here
    if Hp_out != H_out:
        w_t = jnp.pad(w_t, ((0, 0), (0, Hp_out - H_out)))
    if compute_dtype is not None:
        w_t = w_t.astype(compute_dtype)
    b2d = jnp.asarray(bias).astype(jnp.float32)
    if Hp_out != H_out:
        b2d = jnp.pad(b2d, (0, Hp_out - H_out))
    return w_t, b2d.reshape(1, Hp_out)


def _choose_tiles(M, K, Hp_out, x_bytes, w_bytes, out_bytes, budget, row_align):
    """Pick (tile_m, tile_n) under the VMEM budget."""
    tm_probe = min(_ROW_ALIGN, _round_up(max(M, 1), row_align))

    # tile_n: keep the whole weight resident if it fits, otherwise stream
    # double-buffered (K, tile_n) column blocks of the weight.
    tile_n = Hp_out
    while True:
        nbuf = 1 if tile_n == Hp_out else 2
        fixed = nbuf * tile_n * (K * w_bytes + 4)               # weight + f32 bias buffers
        if fixed + tm_probe * 2 * (K * x_bytes + tile_n * out_bytes) <= budget:
            break
        if tile_n <= _LANE:
            break
        tile_n = max(_LANE, _round_up(tile_n // 2, _LANE))

    nbuf = 1 if tile_n == Hp_out else 2
    fixed = nbuf * tile_n * (K * w_bytes + 4)
    per_row = 2 * (K * x_bytes + tile_n * out_bytes)            # double-buffered x + out
    t = max(row_align, (budget - fixed) // max(per_row, 1))

    if M <= _SMALL_M:
        # Tiny batch: one tile, rounded to the dtype-correct sublane packing
        # instead of padding up to 256+ rows.
        tile_m = min(int(t), _round_up(max(M, 1), row_align))
        tile_m = max(row_align, (tile_m // row_align) * row_align)
    else:
        # Cap so the row axis has >= _MIN_M_STEPS grid steps: overlaps x/out
        # DMA with the MXU and gives both v7x TensorCores work.
        t = min(int(t), _MAX_TILE_M,
                _round_up(pl.cdiv(M, _MIN_M_STEPS), _ROW_ALIGN))
        tile_m = max(_ROW_ALIGN, (t // _ROW_ALIGN) * _ROW_ALIGN)
        if fixed + tile_m * per_row > budget:                   # huge-K corner case
            tile_m = max(row_align,
                         ((budget - fixed) // per_row // row_align) * row_align)
    return tile_m, tile_n


def pooler_forward(hidden_states, w_t, b2d, *, out_dtype=None,
                   tile_m=None, tile_n=None, interpret=False):
    """hidden_states: [..., H]; (w_t, b2d) from prepare_pooler_params."""
    orig_shape = hidden_states.shape
    H = orig_shape[-1]
    K, Hp_out = w_t.shape
    if K != H:
        raise ValueError(f"weight K dim {K} does not match hidden size {H}")
    out_dtype = hidden_states.dtype if out_dtype is None else out_dtype

    x2d = hidden_states.reshape(-1, H)       # view-like reshape, no HBM pass
    M = x2d.shape[0]

    x_bytes = jnp.dtype(hidden_states.dtype).itemsize
    w_bytes = jnp.dtype(w_t.dtype).itemsize
    o_bytes = jnp.dtype(out_dtype).itemsize

    budget, limit = _vmem_budget_and_limit()
    row_align = _row_align(hidden_states.dtype, out_dtype)
    auto_m, auto_n = _choose_tiles(M, K, Hp_out, x_bytes, w_bytes, o_bytes,
                                   budget, row_align)
    tile_m = auto_m if tile_m is None else tile_m
    tile_n = auto_n if tile_n is None else tile_n

    grid_m = pl.cdiv(M, tile_m)              # ragged last M block handled by Pallas
    grid_n = pl.cdiv(Hp_out, tile_n)
    resident_w = (grid_n == 1)

    # x rows: pipelined (double-buffered) across the row axis.
    # TODO(synk): bump to pl.Buffered(3) if a bundle dump shows exposed DMA
    # waits at tile boundaries (large-H f32 inputs) and the budget allows it.
    x_spec = pl.BlockSpec((tile_m, K), lambda i, j: (i, 0))
    if resident_w:
        # Constant blocks: single buffer, stays resident across the whole grid.
        w_spec = pl.BlockSpec((K, tile_n), lambda i, j: (0, j),
                              pipeline_mode=pl.Buffered(1))
        b_spec = pl.BlockSpec((1, tile_n), lambda i, j: (0, j),
                              pipeline_mode=pl.Buffered(1))
    else:
        # Streamed weight column blocks: default double-buffering to overlap
        # the next weight block's DMA with the current dot.
        w_spec = pl.BlockSpec((K, tile_n), lambda i, j: (0, j))
        b_spec = pl.BlockSpec((1, tile_n), lambda i, j: (0, j))

    out = pl.pallas_call(
        pooler_kernel,
        out_shape=jax.ShapeDtypeStruct((M, Hp_out), out_dtype),
        grid_spec=pltpu.PrefetchScalarGridSpec(
            num_scalar_prefetch=0,
            grid=(grid_m, grid_n),
            in_specs=[x_spec, w_spec, b_spec],
            out_specs=pl.BlockSpec((tile_m, tile_n), lambda i, j: (i, j)),
        ),
        compiler_params=pltpu.CompilerParams(
            # Both axes are independent (full K per dot): row tiles shard
            # across the two v7x TensorCores.
            dimension_semantics=("parallel", "parallel"),
            vmem_limit_bytes=int(limit),
        ),
        interpret=interpret,
    )(x2d, w_t, b2d)

    if Hp_out != H:
        out = out[:, :H]                     # strip lane padding (only if H % 128 != 0)
    return out.reshape(orig_shape)


def reference_pooler(hidden_states, weight, bias):
    # Pure-JAX reference matching nn.Linear + tanh
    return jnp.tanh(jnp.einsum("...i,oi->...o", hidden_states, weight) + bias)


if __name__ == "__main__":
    key = jax.random.PRNGKey(0)
    k_x, k_w, k_b = jax.random.split(key, 3)

    batch, seq, hidden = 2, 8, 32

    # Deterministic synthetic parameters (not loaded from a checkpoint)
    weight = jax.random.normal(k_w, (hidden, hidden), dtype=jnp.float32) * 0.05
    bias = jax.random.normal(k_b, (hidden,), dtype=jnp.float32) * 0.01
    hidden_states = jax.random.normal(k_x, (batch, seq, hidden), dtype=jnp.float32)

    ref = reference_pooler(hidden_states, weight, bias)

    # f32 path (exact within f32 tolerance)
    w_t, b2d = prepare_pooler_params(weight, bias)          # one-time prep
    out = jax.block_until_ready(pooler_forward(hidden_states, w_t, b2d))
    assert out.shape == (batch, seq, hidden)
    assert jnp.allclose(out, ref, atol=1e-5, rtol=1e-5), "f32 mismatch vs reference"

    # bf16-weight path: activations stay f32 in HBM, cast to bf16 inside the
    # kernel (f32 accumulation) — no wrapper-side astype pass.
    w_bf, b_bf = prepare_pooler_params(weight, bias, compute_dtype=jnp.bfloat16)
    out_bf = jax.block_until_ready(pooler_forward(hidden_states, w_bf, b_bf))
    assert out_bf.shape == (batch, seq, hidden)
    assert jnp.allclose(out_bf, ref, atol=3e-2, rtol=3e-2), "bf16 mismatch vs reference"

    # bf16 output option (halves the store-side HBM traffic when downstream
    # tolerates it); accumulation, bias-add and tanh remain f32.
    out_bf_o = jax.block_until_ready(
        pooler_forward(hidden_states, w_t, b2d, out_dtype=jnp.bfloat16))
    assert out_bf_o.shape == (batch, seq, hidden)
    assert jnp.allclose(out_bf_o.astype(jnp.float32), ref, atol=1e-2, rtol=1e-2), \
        "bf16-output mismatch vs reference"

    print("KERNEL_OK")
</pallas_src>

<mosaic_0001>
module attributes {stable_mosaic.version = 11 : i64} {
  func.func @pooler_kernel(%arg0: i32, %arg1: i32, %arg2: memref<16x32xf32, #tpu.memory_space<vmem>>, %arg3: memref<32x128xf32, #tpu.memory_space<vmem>>, %arg4: memref<1x128xf32, #tpu.memory_space<vmem>>, %arg5: memref<16x128xf32, #tpu.memory_space<vmem>>) attributes {dimension_semantics = [#tpu.dimension_semantics<parallel>, #tpu.dimension_semantics<parallel>], iteration_bounds = array<i64: 1, 1>, scalar_prefetch = 0 : i64, scratch_operands = 0 : i64, tpu.core_type = #tpu.core_type<tc>, window_params = [{transform_indices = @transform_0, window_bounds = array<i64: 16, 32>}, {pipeline_mode = #tpu.pipeline_mode<synchronous>, transform_indices = @transform_1, window_bounds = array<i64: 32, 128>}, {pipeline_mode = #tpu.pipeline_mode<synchronous>, transform_indices = @transform_2, window_bounds = array<i64: 1, 128>}, {transform_indices = @transform_3, window_bounds = array<i64: 16, 128>}]} {
    %c0 = arith.constant 0 : index
    %c0_0 = arith.constant 0 : index
    %0 = vector.load %arg2[%c0, %c0_0] : memref<16x32xf32, #tpu.memory_space<vmem>>, vector<16x32xf32>
    %c0_1 = arith.constant 0 : index
    %c0_2 = arith.constant 0 : index
    %1 = vector.load %arg3[%c0_1, %c0_2] : memref<32x128xf32, #tpu.memory_space<vmem>>, vector<32x128xf32>
    %cst = arith.constant dense<0.000000e+00> : vector<16x128xf32>
    %2 = tpu.matmul %0, %1, %cst {dimension_numbers = #tpu.dot_dimension_numbers<[1], [0], [0], [1], [0, 0, 1, 1], [], []>} : vector<16x32xf32>, vector<32x128xf32>, vector<16x128xf32> -> vector<16x128xf32>
    %c0_3 = arith.constant 0 : index
    %c0_4 = arith.constant 0 : index
    %3 = vector.load %arg4[%c0_3, %c0_4] : memref<1x128xf32, #tpu.memory_space<vmem>>, vector<1x128xf32>
    %4 = vector.broadcast %3 : vector<1x128xf32> to vector<16x128xf32>
    %5 = arith.addf %2, %4 : vector<16x128xf32>
    %6 = math.tanh %5 : vector<16x128xf32>
    %c0_5 = arith.constant 0 : index
    %c0_6 = arith.constant 0 : index
    %7 = vector.load %arg5[%c0_5, %c0_6] : memref<16x128xf32, #tpu.memory_space<vmem>>, vector<16x128xf32>
    tpu.vector_store %arg5[%c0_5, %c0_6], %6 {strides = array<i32>} : memref<16x128xf32, #tpu.memory_space<vmem>>, vector<16x128xf32>,
    return
  }
  func.func @transform_0(%arg0: i32, %arg1: i32) -> (i32, i32) {
    %c0_i32 = arith.constant 0 : i32
    %c0_i32_0 = arith.constant 0 : i32
    return %arg0, %c0_i32 : i32, i32
  }
  func.func @transform_1(%arg0: i32, %arg1: i32) -> (i32, i32) {
    %c0_i32 = arith.constant 0 : i32
    %c0_i32_0 = arith.constant 0 : i32
    return %c0_i32, %arg1 : i32, i32
  }
  func.func @transform_2(%arg0: i32, %arg1: i32) -> (i32, i32) {
    %c0_i32 = arith.constant 0 : i32
    %c0_i32_0 = arith.constant 0 : i32
    return %c0_i32, %arg1 : i32, i32
  }
  func.func @transform_3(%arg0: i32, %arg1: i32) -> (i32, i32) {
    %c0_i32 = arith.constant 0 : i32
    return %arg0, %arg1 : i32, i32
  }
}

</mosaic_0001>

<bundles_post_ra>
// kernel: tpu_custom_call.1
= control target key start
LH: loop header
LB: loop body
LE: loop exit
PB: predicated region body
PF: predicated region fallthrough
CT: control target
= control target key end

     0   :  { %8 = vsyncpa [#allocation3], 0  ;;  %s251_s0 = inlined_call_operand.hbm [shape: f32[16,32], index: 0, kind: input, shape index: {}]   ;;  %s252_s1 = inlined_call_operand.hbm [shape: f32[32,128], index: 1, kind: input, shape index: {}]   ;;  %s253_s2 = inlined_call_operand.vmem [shape: f32[1,128], index: 2, kind: input, shape index: {}]   ;;  %s254_s3 = inlined_call_operand.hbm [shape: f32[16,128], index: 3, kind: output, shape index: {}]  }
   0x1   :  { %9 = vsyncpa [#allocation6], 0 }
   0x2   :  { %10 = vsyncpa [#allocation4], 0  ;;  %s15_s14 = sshll.u32 %s251_s0, 4  ;;  %s205_s15 = smov [#allocation2]   ;;  %s16_s14 = int_to_ptr.hbm [resolvable:$true] %s15_s14 }
   0x3   :  { %s17_s16 = sshll.u32 %s205_s15, 4  ;;  %s28_s19 = sshll.u32 %s252_s1, 4  ;;  %s18_s16 = int_to_ptr.vmem [resolvable:$true] %s17_s16  ;;  %s29_s19 = int_to_ptr.hbm [resolvable:$true] %s28_s19 }
   0x4   :  { %s206_s20 = smov 128   ;;  %s207_s21 = smov 8  }
   0x5   :  { %23 = dma.hbm_to_vmem [thread:$0]  %s16_s14, 256, %s18_s16, [#allocation3], %s206_s20, %s206_s20, %s207_s21  }
   0x6   :  { %s208_s22 = smov [#allocation5]  }
   0x7   :  { %s30_s23 = sshll.u32 %s208_s22, 4  ;;  %s31_s23 = int_to_ptr.vmem [resolvable:$true] %s30_s23 }
   0x8   :  { %36 = dma.hbm_to_vmem [thread:$0]  %s29_s19, 512, %s31_s23, [#allocation6], %s206_s20, %s206_s20, %s207_s21  }
   0x9   :  { %199 = dma.done.wait [#allocation3], 256  }
   0xa   :  { %200 = vsyncadd [#allocation3], 4294967040 }
   0xb   :  { %201 = dma.done.wait [#allocation6], 512  }
   0xc   :  { %202 = vsyncadd [#allocation6], 4294966784  ;;  %v52_v0 = vld [vmem:[#allocation5 + $0x18] sm:$0xff]  ;;  %v51_v1 = vld [vmem:[#allocation5 + $0x10] sm:$0xff]  ;;  %vm57_vm0 = vcmask 261120   ;;  %s209_s24 = smov [#allocation7]  }
   0xd   :  { %76 = vmatpush.msra.mxu0 %v52_v0  ;;  %113 = vmatpush.msra.mxu1 %v52_v0  ;;  %v50_v2 = vld [vmem:[#allocation5 + $0x8] sm:$0xff]  ;;  %v49_v3 = vld [vmem:[#allocation5] sm:$0xff]  ;;  %v47_v4 = vld [vmem:[#allocation2] sm:$0xff]  ;;  %s95_s25 = sshll.u32 %s209_s24, 4  ;;  %s97_s28 = sshll.u32 %s254_s3, 4  ;;  %s96_s25 = int_to_ptr.vmem [resolvable:$true] %s95_s25  ;;  %s98_s28 = int_to_ptr.hbm [resolvable:$true] %s97_s28 }
   0xe   :  { %v48_v5 = vld [vmem:[#allocation2 + $0x8] sm:$0xff]  ;;  %v122_v6 = vld [vmem:[%s253_s2] ss:$0 sm:$0xff] }
   0xf   :  { %77 = vmatpush.msra.mxu0 %v51_v1  ;;  %114 = vmatpush.msra.mxu1 %v51_v1 }
  0x11   :  { %78 = vmatpush.msra.mxu0 %v50_v2  ;;  %115 = vmatpush.msra.mxu1 %v50_v2 }
  0x13   :  { %79 = vmatpush.msra.mxu0 %v49_v3  ;;  %116 = vmatpush.msra.mxu1 %v49_v3 }
  0x14   :  { %111 = vmatmul.msk.f32.vlgmr.msra.gmra.mxu0 %vm57_vm0, %v47_v4  ;;  %112 = vmatmul.msk.f32.vlgmr.msra.gmra.mxu1 %vm57_vm0, %v48_v5 }
  0x91   :  { %v81_v7 = vpop.f32.mrf.mxu0  ;;  %v84_v8 = vpop.f32.mrf.mxu1 }
  0x92   :  { %v82_v9 = vadd.f32 %v122_v6, %v81_v7  ;;  %v85_v10 = vadd.f32 %v122_v6, %v84_v8 }
  0x94   :  { %123 = vtanh.f32 %v82_v9 }
  0x95   :  { %125 = vtanh.f32 %v85_v10 }
  0x9a   :  { %v124_v11 = vpop.eup %123 }
  0x9b   :  { %v126_v12 = vpop.eup %125  ;;  %89 = vst [vmem:[#allocation7] sm:$0xff] %v124_v11 }
  0x9c   :  { %90 = vst [vmem:[#allocation7 + $0x8] sm:$0xff] %v126_v12 }
  0x9d   :  { %103 = dma.vmem_to_hbm [thread:$0]  %s96_s25, 256, %s98_s28, [#allocation4], %s206_s20, %s206_s20, %s207_s21  }
  0x9e   :  { %203 = dma.done.wait [#allocation4], 256  }
  0x9f   :  { %204 = vsyncadd [#allocation4], 4294967040 }
  0xa0   :  { %108 = vsyncpa [#allocation3], 1 }
  0xa1   :  { %109 = vsyncpa [#allocation6], 1 }
  0xa2   :  { %110 = vsyncpa [#allocation4], 1 }

</bundles_post_ra>
